<compile_context>
chip_gen: v6e
topology: v6e:2x2x1
jax: 0.10.0
libtpu: 0.0.40
codegen_flags: <defaults>
</compile_context>

<pallas_src>
import math

import jax
import jax.numpy as jnp
from jax.experimental import pallas as pl
from jax.experimental.pallas import tpu as pltpu


def _round_up(x, m):
    return ((x + m - 1) // m) * m


def _trim_amounts(kernel_size, stride, causal, trim_right_ratio):
    padding_total = kernel_size - stride
    if causal:
        pad_right = math.ceil(padding_total * trim_right_ratio)
        pad_left = padding_total - pad_right
    else:
        pad_right = padding_total // 2
        pad_left = padding_total - pad_right
    return pad_left, pad_right


def _shift_plan(kernel_size, stride, pad_left, cout):
    """Group transposed-conv taps by input shift.

    Trimmed output column t = v*S + q uses
        sum_s  x[v + s] @ W[:, :, q + pad_left - s*S]
    over all shifts s with 0 <= q + pad_left - s*S < K.  For a fixed s the valid
    phases q form a contiguous range, so the taps of one shift pack into a single
    wide matmul RHS whose result lands in a contiguous lane slice of the
    (t_tile, S*Cout) accumulator.  Each tap k appears exactly once overall.
    """
    K, S = kernel_size, stride
    s_min = -((K - pad_left - 1) // S)
    s_max = (S - 1 + pad_left) // S
    plan = []  # (shift, lane_offset, col_offset, width, taps)
    col = 0
    for s in range(s_min, s_max + 1):
        q_lo = max(0, s * S - pad_left)
        q_hi = min(S - 1, s * S + K - pad_left - 1)
        if q_lo > q_hi:
            continue
        taps = tuple(q + pad_left - s * S for q in range(q_lo, q_hi + 1))
        width = len(taps) * cout
        plan.append((s, q_lo * cout, col, width, taps))
        col += width
    assert col == K * cout, (col, K, cout)
    halo_left = max(0, -plan[0][0])
    halo_right = max(0, plan[-1][0])
    return plan, halo_left, halo_right


def _vmem_limit_bytes():
    cap = 64 * 1024 * 1024  # conservative default (v7x physical VMEM per core)
    try:
        info = pltpu.get_tpu_info()
        cap = int(getattr(info, "vmem_capacity_bytes", cap)) or cap
    except Exception:
        pass
    # Headroom for Mosaic internal scratch: 48 MiB on v7x, 96 MiB on v5e/v6e.
    return min((cap * 3) // 4, 96 * 1024 * 1024)


def _auto_t_tile(T, cin, cout, stride, ksize, in_bytes, out_bytes, w_bytes,
                 vmem_limit):
    # weight (worst case double-buffered) is fixed cost; per-row cost covers the
    # double-buffered input + output blocks and the f32 accumulator scratch.
    budget = int(0.70 * vmem_limit) - 2 * cin * ksize * cout * w_bytes
    per_row = 2 * cin * in_bytes + stride * cout * (2 * out_bytes + 4)
    t = max(budget // max(per_row, 1), 8)
    t = min(t, 4096, _round_up(T, 8))
    if t >= 256:
        t = (t // 128) * 128      # lane/sublane friendly tiles on real problems
    else:
        t = max(8, (t // 8) * 8)
    return t


def _make_kernel(*, t_tile, stride, cout, halo_left, halo_right, plan):
    s_cout = stride * cout

    def kernel(x_ref, halo_ref, w_ref, b_ref, o_ref, acc_ref):
        # x_ref   : (t_tile, Cin)         input rows of this time tile (NTC)
        # halo_ref: (halo_tot, Cin)       rows just before / after the tile
        # w_ref   : (Cin, K*Cout)         shift-grouped, lane-packed weights
        # b_ref   : (1, S*Cout)  f32      bias tiled across the S phases
        # o_ref   : (t_tile, S*Cout)      output tile (phases packed on lanes)
        # acc_ref : (t_tile, S*Cout) f32  accumulator scratch
        pieces = []
        if halo_left > 0:
            pieces.append(halo_ref[:halo_left, :])
        pieces.append(x_ref[...])
        if halo_right > 0:
            pieces.append(halo_ref[halo_left:halo_left + halo_right, :])
        xw = jnp.concatenate(pieces, axis=0) if len(pieces) > 1 else pieces[0]

        # Initialise the accumulator with the phase-tiled bias (f32).
        acc_ref[...] = jnp.broadcast_to(b_ref[...], (t_tile, s_cout))

        # One wide MXU matmul per distinct input shift (<= ceil(K/S)+1), each
        # accumulating f32 into a contiguous lane slice of the accumulator.
        for s, lane_off, col, width, _taps in plan:
            off = halo_left + s                       # static, >= 0
            x_s = xw[off:off + t_tile, :]
            part = jnp.dot(x_s, w_ref[:, col:col + width],
                           preferred_element_type=jnp.float32)
            acc_ref[:, lane_off:lane_off + width] += part

        # Single dense, lane-wide store of the whole tile.
        o_ref[...] = acc_ref[...].astype(o_ref.dtype)

    return kernel


def sconv_transpose1d_ntc(x_ntc, weight, bias, *, stride, causal=False,
                          trim_right_ratio=1.0, t_tile=None,
                          mm_dtype=jnp.bfloat16, out_dtype=None):
    """SConvTranspose1d forward in TPU-friendly NTC layout.

    x_ntc : (B, T, Cin);  weight : (Cin, Cout, K) (PyTorch ConvTranspose1d
    layout);  bias : (Cout,).  Returns (B, T*stride, Cout) in `out_dtype`
    (default: x dtype).  `mm_dtype` is the matmul input dtype (default bf16;
    accumulation is always f32); pass None for an exact f32 path.
    """
    B, T, Cin = x_ntc.shape
    w_cin, Cout, K = weight.shape
    assert w_cin == Cin, (w_cin, Cin)
    S = int(stride)
    assert 1 <= S <= K, (S, K)

    out_dtype = x_ntc.dtype if out_dtype is None else out_dtype
    mm_dtype = x_ntc.dtype if mm_dtype is None else mm_dtype

    pad_left, _ = _trim_amounts(K, S, causal, trim_right_ratio)
    plan, halo_left, halo_right = _shift_plan(K, S, pad_left, Cout)
    halo_tot = max(halo_left + halo_right, 1)   # >=1 so the operand is never empty

    vmem_limit = _vmem_limit_bytes()
    if t_tile is None:
        t_tile = _auto_t_tile(T, Cin, Cout, S, K,
                              jnp.dtype(mm_dtype).itemsize,
                              jnp.dtype(out_dtype).itemsize,
                              jnp.dtype(mm_dtype).itemsize, vmem_limit)
    t_tile = max(8, _round_up(min(t_tile, _round_up(T, 8)), 8))
    n_tiles = -(-T // t_tile)
    Tp = n_tiles * t_tile

    # bf16 (or requested) matmul dtype: cast once in HBM -> halves input/weight
    # DMA and VMEM residency; in-kernel accumulation stays f32.
    x_proc = x_ntc.astype(mm_dtype)
    if Tp != T:
        # Pad the (small, pre-upsampling) input so no in-kernel masking is
        # needed; zero rows past T contribute nothing to a transposed conv
        # (exact), and out-of-range rows of the last output block are discarded.
        x_proc = jnp.pad(x_proc, ((0, 0), (0, Tp - T), (0, 0)))

    # Halo rows each tile needs from its neighbours (tiny gather, once, in XLA).
    starts = jnp.arange(n_tiles, dtype=jnp.int32) * t_tile
    lidx = starts[:, None] + jnp.arange(-halo_left, 0, dtype=jnp.int32)[None, :]
    ridx = starts[:, None] + t_tile + jnp.arange(
        halo_tot - halo_left, dtype=jnp.int32)[None, :]
    idx = jnp.concatenate([lidx, ridx], axis=1)              # (n_tiles, halo_tot)
    valid = (idx >= 0) & (idx < T)
    halo_rows = jnp.take(x_proc, jnp.clip(idx, 0, Tp - 1), axis=1)
    halo_rows = jnp.where(valid[None, :, :, None], halo_rows,
                          jnp.zeros((), x_proc.dtype))       # (B, n, halo_tot, Cin)

    # Shift-grouped, lane-packed weights (Cin, K*Cout); bias tiled over phases.
    w_packed = jnp.concatenate(
        [weight[:, :, k] for (_s, _lo, _col, _w, taps) in plan for k in taps],
        axis=1).astype(mm_dtype)
    b_tiled = jnp.tile(bias.astype(jnp.float32).reshape(1, Cout), (1, S))

    kernel = _make_kernel(t_tile=t_tile, stride=S, cout=Cout,
                          halo_left=halo_left, halo_right=halo_right, plan=plan)

    def run(single_buffer_resident):
        resident_kw = ({"pipeline_mode": pl.Buffered(1)}
                       if single_buffer_resident else {})
        return pl.pallas_call(
            kernel,
            out_shape=jax.ShapeDtypeStruct((B, T, S * Cout), out_dtype),
            grid=(n_tiles, B),   # long time axis leading -> megacore splits it
            in_specs=[
                pl.BlockSpec((None, t_tile, Cin), lambda j, b: (b, j, 0)),
                pl.BlockSpec((None, None, halo_tot, Cin),
                             lambda j, b: (b, j, 0, 0)),
                pl.BlockSpec((Cin, K * Cout), lambda j, b: (0, 0), **resident_kw),
                pl.BlockSpec((1, S * Cout), lambda j, b: (0, 0), **resident_kw),
            ],
            out_specs=pl.BlockSpec((None, t_tile, S * Cout),
                                   lambda j, b: (b, j, 0)),
            scratch_shapes=[pltpu.VMEM((t_tile, S * Cout), jnp.float32)],
            compiler_params=pltpu.CompilerParams(
                dimension_semantics=("parallel", "parallel"),
                vmem_limit_bytes=vmem_limit,
            ),
        )(x_proc, halo_rows, w_packed, b_tiled)

    try:
        out = run(True)    # resident weight/bias single-buffered (saves VMEM)
    except Exception:
        out = run(False)   # fallback if this Pallas build rejects Buffered(1)

    # (B, T, S*Cout) -> (B, T*S, Cout): row-major merge, no data movement.
    return out.reshape(B, T * S, Cout)


def sconv_transpose1d(x, weight, bias, *, stride, causal=False,
                      trim_right_ratio=1.0, t_tile=None,
                      mm_dtype=jnp.bfloat16, out_dtype=None):
    """PyTorch-layout wrapper: x (B, Cin, T) -> (B, Cout, T*stride).

    NOTE: an end-to-end NTC pipeline should call `sconv_transpose1d_ntc`
    directly and skip both transposes (they exist only to match the PyTorch
    NCT contract and re-read/write the S x larger output in HBM).
    """
    # TODO(synk): non-default `norm` variants of NormConvTranspose1d (weight /
    # spectral parametrizations, group norm) are not fused; only the default
    # 'no_norm' path is implemented.
    x_ntc = jnp.transpose(x, (0, 2, 1))
    out_ntc = sconv_transpose1d_ntc(
        x_ntc, weight, bias, stride=stride, causal=causal,
        trim_right_ratio=trim_right_ratio, t_tile=t_tile,
        mm_dtype=mm_dtype, out_dtype=out_dtype)
    return jnp.transpose(out_ntc, (0, 2, 1))


def _reference(x, weight, bias, stride, causal=False, trim_right_ratio=1.0):
    """Pure-JAX ConvTranspose1d + unpad1d, straight from the definition."""
    B, Cin, T = x.shape
    _, Cout, K = weight.shape
    S = int(stride)
    full_len = (T - 1) * S + K
    y = jnp.zeros((B, Cout, full_len), jnp.float32)
    for k in range(K):
        contrib = jnp.einsum("bct,co->bot", x, weight[:, :, k])
        y = y.at[:, :, k:k + (T - 1) * S + 1:S].add(contrib)
    y = y + bias[None, :, None]
    pad_left, pad_right = _trim_amounts(K, S, causal, trim_right_ratio)
    return y[:, :, pad_left:full_len - pad_right]


if __name__ == "__main__":
    # Small encodec-decoder-like config: upsample by stride=2 with kernel 4.
    # T chosen so T % t_tile != 0 -> exercises halo + partial-last-tile paths.
    B, Cin, Cout, K, S, T = 2, 8, 4, 4, 2, 20

    key = jax.random.PRNGKey(0)
    kx, kw, kb = jax.random.split(key, 3)
    x = jax.random.normal(kx, (B, Cin, T), dtype=jnp.float32)
    weight = 0.1 * jax.random.normal(kw, (Cin, Cout, K), dtype=jnp.float32)
    bias = 0.1 * jax.random.normal(kb, (Cout,), dtype=jnp.float32)

    ref = _reference(x, weight, bias, S)

    # Exact f32 matmul path, multiple time tiles (halo + partial last tile).
    out_f32 = jax.block_until_ready(
        sconv_transpose1d(x, weight, bias, stride=S, t_tile=8,
                          mm_dtype=jnp.float32))
    assert out_f32.shape == (B, Cout, T * S), out_f32.shape
    assert out_f32.dtype == jnp.float32
    err = float(jnp.max(jnp.abs(out_f32 - ref)))
    assert jnp.allclose(out_f32, ref, atol=1e-5, rtol=1e-5), err

    # Default perf path: bf16 matmuls (f32 accumulation), auto tile size.
    out_bf16 = jax.block_until_ready(sconv_transpose1d(x, weight, bias, stride=S))
    assert out_bf16.shape == (B, Cout, T * S)
    err_bf = float(jnp.max(jnp.abs(out_bf16 - ref)))
    assert jnp.allclose(out_bf16, ref, atol=5e-2, rtol=5e-2), err_bf

    # Causal trimming (pad_left = 0 -> left-halo-only path).
    ref_c = _reference(x, weight, bias, S, causal=True)
    out_c = jax.block_until_ready(
        sconv_transpose1d(x, weight, bias, stride=S, causal=True, t_tile=8,
                          mm_dtype=jnp.float32))
    assert jnp.allclose(out_c, ref_c, atol=1e-5, rtol=1e-5)

    # kernel_size == stride (no halo needed; dummy halo-row path).
    w2 = weight[:, :, :S]
    ref_ks = _reference(x, w2, bias, S)
    out_ks = jax.block_until_ready(
        sconv_transpose1d(x, w2, bias, stride=S, t_tile=8, mm_dtype=jnp.float32))
    assert jnp.allclose(out_ks, ref_ks, atol=1e-5, rtol=1e-5)

    print("KERNEL_OK")
</pallas_src>

<mosaic_0001>
module attributes {stable_mosaic.version = 11 : i64} {
  func.func @kernel(%arg0: i32, %arg1: i32, %arg2: memref<1x8x8xf32, #tpu.memory_space<vmem>>, %arg3: memref<1x1x2x8xf32, #tpu.memory_space<vmem>>, %arg4: memref<8x16xf32, #tpu.memory_space<vmem>>, %arg5: memref<1x8xf32, #tpu.memory_space<vmem>>, %arg6: memref<1x8x8xf32, #tpu.memory_space<vmem>>, %arg7: memref<8x8xf32, #tpu.memory_space<vmem>>) attributes {dimension_semantics = [#tpu.dimension_semantics<parallel>, #tpu.dimension_semantics<parallel>], iteration_bounds = array<i64: 3, 2>, scalar_prefetch = 0 : i64, scratch_operands = 1 : i64, tpu.core_type = #tpu.core_type<tc>, window_params = [{transform_indices = @transform_0, window_bounds = array<i64: 1, 8, 8>}, {transform_indices = @transform_1, window_bounds = array<i64: 1, 1, 2, 8>}, {pipeline_mode = #tpu.pipeline_mode<synchronous>, transform_indices = @transform_2, window_bounds = array<i64: 8, 16>}, {pipeline_mode = #tpu.pipeline_mode<synchronous>, transform_indices = @transform_3, window_bounds = array<i64: 1, 8>}, {transform_indices = @transform_4, window_bounds = array<i64: 1, 8, 8>}]} {
    %c0 = arith.constant 0 : index
    %c0_0 = arith.constant 0 : index
    %c0_1 = arith.constant 0 : index
    %c0_2 = arith.constant 0 : index
    %0 = vector.load %arg3[%c0, %c0_0, %c0_1, %c0_2] : memref<1x1x2x8xf32, #tpu.memory_space<vmem>>, vector<1x1x1x8xf32>
    %1 = vector.shape_cast %0 : vector<1x1x1x8xf32> to vector<1x8xf32>
    %c0_3 = arith.constant 0 : index
    %c0_4 = arith.constant 0 : index
    %c0_5 = arith.constant 0 : index
    %2 = vector.load %arg2[%c0_3, %c0_4, %c0_5] : memref<1x8x8xf32, #tpu.memory_space<vmem>>, vector<1x8x8xf32>
    %3 = vector.shape_cast %2 : vector<1x8x8xf32> to vector<8x8xf32>
    %c0_6 = arith.constant 0 : index
    %c0_7 = arith.constant 0 : index
    %c1 = arith.constant 1 : index
    %c0_8 = arith.constant 0 : index
    %4 = vector.load %arg3[%c0_6, %c0_7, %c1, %c0_8] : memref<1x1x2x8xf32, #tpu.memory_space<vmem>>, vector<1x1x1x8xf32>
    %5 = vector.shape_cast %4 : vector<1x1x1x8xf32> to vector<1x8xf32>
    %6 = tpu.concatenate %1, %3, %5 in 0 : vector<1x8xf32>, vector<8x8xf32>, vector<1x8xf32> -> vector<10x8xf32>
    %c0_9 = arith.constant 0 : index
    %c0_10 = arith.constant 0 : index
    %7 = vector.load %arg5[%c0_9, %c0_10] : memref<1x8xf32, #tpu.memory_space<vmem>>, vector<1x8xf32>
    %8 = vector.shape_cast %7 : vector<1x8xf32> to vector<1x8xf32>
    %9 = vector.broadcast %8 : vector<1x8xf32> to vector<8x8xf32>
    %c0_11 = arith.constant 0 : index
    %c0_12 = arith.constant 0 : index
    %10 = vector.load %arg7[%c0_11, %c0_12] : memref<8x8xf32, #tpu.memory_space<vmem>>, vector<8x8xf32>
    tpu.vector_store %arg7[%c0_11, %c0_12], %9 {strides = array<i32>} : memref<8x8xf32, #tpu.memory_space<vmem>>, vector<8x8xf32>,
    %11 = vector.extract_strided_slice %6 {offsets = [0, 0], sizes = [8, 8], strides = [1, 1]} : vector<10x8xf32> to vector<8x8xf32>
    %c0_13 = arith.constant 0 : index
    %c0_14 = arith.constant 0 : index
    %12 = vector.load %arg4[%c0_13, %c0_14] : memref<8x16xf32, #tpu.memory_space<vmem>>, vector<8x4xf32>
    %cst = arith.constant dense<0.000000e+00> : vector<8x4xf32>
    %13 = tpu.matmul %11, %12, %cst {dimension_numbers = #tpu.dot_dimension_numbers<[1], [0], [0], [1], [0, 0, 1, 1], [], []>} : vector<8x8xf32>, vector<8x4xf32>, vector<8x4xf32> -> vector<8x4xf32>
    %c0_15 = arith.constant 0 : index
    %c0_16 = arith.constant 0 : index
    %14 = vector.load %arg7[%c0_15, %c0_16] : memref<8x8xf32, #tpu.memory_space<vmem>>, vector<8x4xf32>
    %15 = arith.addf %14, %13 : vector<8x4xf32>
    %c0_17 = arith.constant 0 : index
    %c0_18 = arith.constant 0 : index
    %16 = vector.load %arg7[%c0_17, %c0_18] : memref<8x8xf32, #tpu.memory_space<vmem>>, vector<8x4xf32>
    tpu.vector_store %arg7[%c0_17, %c0_18], %15 {strides = array<i32>} : memref<8x8xf32, #tpu.memory_space<vmem>>, vector<8x4xf32>,
    %17 = vector.extract_strided_slice %6 {offsets = [1, 0], sizes = [8, 8], strides = [1, 1]} : vector<10x8xf32> to vector<8x8xf32>
    %c0_19 = arith.constant 0 : index
    %c4 = arith.constant 4 : index
    %18 = vector.load %arg4[%c0_19, %c4] : memref<8x16xf32, #tpu.memory_space<vmem>>, vector<8x8xf32>
    %cst_20 = arith.constant dense<0.000000e+00> : vector<8x8xf32>
    %19 = tpu.matmul %17, %18, %cst_20 {dimension_numbers = #tpu.dot_dimension_numbers<[1], [0], [0], [1], [0, 0, 1, 1], [], []>} : vector<8x8xf32>, vector<8x8xf32>, vector<8x8xf32> -> vector<8x8xf32>
    %c0_21 = arith.constant 0 : index
    %c0_22 = arith.constant 0 : index
    %20 = vector.load %arg7[%c0_21, %c0_22] : memref<8x8xf32, #tpu.memory_space<vmem>>, vector<8x8xf32>
    %21 = arith.addf %20, %19 : vector<8x8xf32>
    %c0_23 = arith.constant 0 : index
    %c0_24 = arith.constant 0 : index
    %22 = vector.load %arg7[%c0_23, %c0_24] : memref<8x8xf32, #tpu.memory_space<vmem>>, vector<8x8xf32>
    tpu.vector_store %arg7[%c0_23, %c0_24], %21 {strides = array<i32>} : memref<8x8xf32, #tpu.memory_space<vmem>>, vector<8x8xf32>,
    %23 = vector.extract_strided_slice %6 {offsets = [2, 0], sizes = [8, 8], strides = [1, 1]} : vector<10x8xf32> to vector<8x8xf32>
    %c0_25 = arith.constant 0 : index
    %c12 = arith.constant 12 : index
    %24 = vector.load %arg4[%c0_25, %c12] : memref<8x16xf32, #tpu.memory_space<vmem>>, vector<8x4xf32>
    %cst_26 = arith.constant dense<0.000000e+00> : vector<8x4xf32>
    %25 = tpu.matmul %23, %24, %cst_26 {dimension_numbers = #tpu.dot_dimension_numbers<[1], [0], [0], [1], [0, 0, 1, 1], [], []>} : vector<8x8xf32>, vector<8x4xf32>, vector<8x4xf32> -> vector<8x4xf32>
    %c0_27 = arith.constant 0 : index
    %c4_28 = arith.constant 4 : index
    %26 = vector.load %arg7[%c0_27, %c4_28] : memref<8x8xf32, #tpu.memory_space<vmem>>, vector<8x4xf32>
    %27 = arith.addf %26, %25 : vector<8x4xf32>
    %c0_29 = arith.constant 0 : index
    %c4_30 = arith.constant 4 : index
    %28 = vector.load %arg7[%c0_29, %c4_30] : memref<8x8xf32, #tpu.memory_space<vmem>>, vector<8x4xf32>
    tpu.vector_store %arg7[%c0_29, %c4_30], %27 {strides = array<i32>} : memref<8x8xf32, #tpu.memory_space<vmem>>, vector<8x4xf32>,
    %c0_31 = arith.constant 0 : index
    %c0_32 = arith.constant 0 : index
    %29 = vector.load %arg7[%c0_31, %c0_32] : memref<8x8xf32, #tpu.memory_space<vmem>>, vector<8x8xf32>
    %c0_33 = arith.constant 0 : index
    %c0_34 = arith.constant 0 : index
    %c0_35 = arith.constant 0 : index
    %30 = vector.load %arg6[%c0_33, %c0_34, %c0_35] : memref<1x8x8xf32, #tpu.memory_space<vmem>>, vector<1x8x8xf32>
    %31 = vector.shape_cast %30 : vector<1x8x8xf32> to vector<8x8xf32>
    %32 = vector.shape_cast %29 : vector<8x8xf32> to vector<1x8x8xf32>
    tpu.vector_store %arg6[%c0_33, %c0_34, %c0_35], %32 {strides = array<i32>} : memref<1x8x8xf32, #tpu.memory_space<vmem>>, vector<1x8x8xf32>,
    return
  }
  func.func @transform_0(%arg0: i32, %arg1: i32) -> (i32, i32, i32) {
    %c0_i32 = arith.constant 0 : i32
    %c0_i32_0 = arith.constant 0 : i32
    return %arg1, %arg0, %c0_i32 : i32, i32, i32
  }
  func.func @transform_1(%arg0: i32, %arg1: i32) -> (i32, i32, i32, i32) {
    %c0_i32 = arith.constant 0 : i32
    %c0_i32_0 = arith.constant 0 : i32
    %c0_i32_1 = arith.constant 0 : i32
    return %arg1, %arg0, %c0_i32, %c0_i32_0 : i32, i32, i32, i32
  }
  func.func @transform_2(%arg0: i32, %arg1: i32) -> (i32, i32) {
    %c0_i32 = arith.constant 0 : i32
    %c0_i32_0 = arith.constant 0 : i32
    %c0_i32_1 = arith.constant 0 : i32
    return %c0_i32, %c0_i32_0 : i32, i32
  }
  func.func @transform_3(%arg0: i32, %arg1: i32) -> (i32, i32) {
    %c0_i32 = arith.constant 0 : i32
    %c0_i32_0 = arith.constant 0 : i32
    %c0_i32_1 = arith.constant 0 : i32
    return %c0_i32, %c0_i32_0 : i32, i32
  }
  func.func @transform_4(%arg0: i32, %arg1: i32) -> (i32, i32, i32) {
    %c0_i32 = arith.constant 0 : i32
    %c0_i32_0 = arith.constant 0 : i32
    return %arg1, %arg0, %c0_i32 : i32, i32, i32
  }
}

module attributes {stable_mosaic.version = 11 : i64} {
  func.func @kernel(%arg0: i32, %arg1: i32, %arg2: memref<1x8x8xf32, #tpu.memory_space<vmem>>, %arg3: memref<1x1x2x8xf32, #tpu.memory_space<vmem>>, %arg4: memref<8x16xf32, #tpu.memory_space<vmem>>, %arg5: memref<1x8xf32, #tpu.memory_space<vmem>>, %arg6: memref<1x8x8xf32, #tpu.memory_space<vmem>>, %arg7: memref<8x8xf32, #tpu.memory_space<vmem>>) attributes {dimension_semantics = [#tpu.dimension_semantics<parallel>, #tpu.dimension_semantics<parallel>], iteration_bounds = array<i64: 3, 2>, scalar_prefetch = 0 : i64, scratch_operands = 1 : i64, tpu.core_type = #tpu.core_type<tc>, window_params = [{transform_indices = @transform_0, window_bounds = array<i64: 1, 8, 8>}, {transform_indices = @transform_1, window_bounds = array<i64: 1, 1, 2, 8>}, {pipeline_mode = #tpu.pipeline_mode<synchronous>, transform_indices = @transform_2, window_bounds = array<i64: 8, 16>}, {pipeline_mode = #tpu.pipeline_mode<synchronous>, transform_indices = @transform_3, window_bounds = array<i64: 1, 8>}, {transform_indices = @transform_4, window_bounds = array<i64: 1, 8, 8>}]} {
    %c0 = arith.constant 0 : index
    %c0_0 = arith.constant 0 : index
    %c0_1 = arith.constant 0 : index
    %c0_2 = arith.constant 0 : index
    %0 = vector.load %arg3[%c0, %c0_0, %c0_1, %c0_2] : memref<1x1x2x8xf32, #tpu.memory_space<vmem>>, vector<1x1x1x8xf32>
    %1 = vector.shape_cast %0 : vector<1x1x1x8xf32> to vector<1x8xf32>
    %c0_3 = arith.constant 0 : index
    %c0_4 = arith.constant 0 : index
    %c0_5 = arith.constant 0 : index
    %2 = vector.load %arg2[%c0_3, %c0_4, %c0_5] : memref<1x8x8xf32, #tpu.memory_space<vmem>>, vector<1x8x8xf32>
    %3 = vector.shape_cast %2 : vector<1x8x8xf32> to vector<8x8xf32>
    %c0_6 = arith.constant 0 : index
    %c0_7 = arith.constant 0 : index
    %c1 = arith.constant 1 : index
    %c0_8 = arith.constant 0 : index
    %4 = vector.load %arg3[%c0_6, %c0_7, %c1, %c0_8] : memref<1x1x2x8xf32, #tpu.memory_space<vmem>>, vector<1x1x1x8xf32>
    %5 = vector.shape_cast %4 : vector<1x1x1x8xf32> to vector<1x8xf32>
    %6 = tpu.concatenate %1, %3, %5 in 0 : vector<1x8xf32>, vector<8x8xf32>, vector<1x8xf32> -> vector<10x8xf32>
    %c0_9 = arith.constant 0 : index
    %c0_10 = arith.constant 0 : index
    %7 = vector.load %arg5[%c0_9, %c0_10] : memref<1x8xf32, #tpu.memory_space<vmem>>, vector<1x8xf32>
    %8 = vector.shape_cast %7 : vector<1x8xf32> to vector<1x8xf32>
    %9 = vector.broadcast %8 : vector<1x8xf32> to vector<8x8xf32>
    %c0_11 = arith.constant 0 : index
    %c0_12 = arith.constant 0 : index
    %10 = vector.load %arg7[%c0_11, %c0_12] : memref<8x8xf32, #tpu.memory_space<vmem>>, vector<8x8xf32>
    tpu.vector_store %arg7[%c0_11, %c0_12], %9 {strides = array<i32>} : memref<8x8xf32, #tpu.memory_space<vmem>>, vector<8x8xf32>,
    %11 = vector.extract_strided_slice %6 {offsets = [0, 0], sizes = [8, 8], strides = [1, 1]} : vector<10x8xf32> to vector<8x8xf32>
    %c0_13 = arith.constant 0 : index
    %c0_14 = arith.constant 0 : index
    %12 = vector.load %arg4[%c0_13, %c0_14] : memref<8x16xf32, #tpu.memory_space<vmem>>, vector<8x4xf32>
    %cst = arith.constant dense<0.000000e+00> : vector<8x4xf32>
    %13 = tpu.matmul %11, %12, %cst {dimension_numbers = #tpu.dot_dimension_numbers<[1], [0], [0], [1], [0, 0, 1, 1], [], []>} : vector<8x8xf32>, vector<8x4xf32>, vector<8x4xf32> -> vector<8x4xf32>
    %c0_15 = arith.constant 0 : index
    %c0_16 = arith.constant 0 : index
    %14 = vector.load %arg7[%c0_15, %c0_16] : memref<8x8xf32, #tpu.memory_space<vmem>>, vector<8x4xf32>
    %15 = arith.addf %14, %13 : vector<8x4xf32>
    %c0_17 = arith.constant 0 : index
    %c0_18 = arith.constant 0 : index
    %16 = vector.load %arg7[%c0_17, %c0_18] : memref<8x8xf32, #tpu.memory_space<vmem>>, vector<8x4xf32>
    tpu.vector_store %arg7[%c0_17, %c0_18], %15 {strides = array<i32>} : memref<8x8xf32, #tpu.memory_space<vmem>>, vector<8x4xf32>,
    %17 = vector.extract_strided_slice %6 {offsets = [1, 0], sizes = [8, 8], strides = [1, 1]} : vector<10x8xf32> to vector<8x8xf32>
    %c0_19 = arith.constant 0 : index
    %c4 = arith.constant 4 : index
    %18 = vector.load %arg4[%c0_19, %c4] : memref<8x16xf32, #tpu.memory_space<vmem>>, vector<8x8xf32>
    %cst_20 = arith.constant dense<0.000000e+00> : vector<8x8xf32>
    %19 = tpu.matmul %17, %18, %cst_20 {dimension_numbers = #tpu.dot_dimension_numbers<[1], [0], [0], [1], [0, 0, 1, 1], [], []>} : vector<8x8xf32>, vector<8x8xf32>, vector<8x8xf32> -> vector<8x8xf32>
    %c0_21 = arith.constant 0 : index
    %c0_22 = arith.constant 0 : index
    %20 = vector.load %arg7[%c0_21, %c0_22] : memref<8x8xf32, #tpu.memory_space<vmem>>, vector<8x8xf32>
    %21 = arith.addf %20, %19 : vector<8x8xf32>
    %c0_23 = arith.constant 0 : index
    %c0_24 = arith.constant 0 : index
    %22 = vector.load %arg7[%c0_23, %c0_24] : memref<8x8xf32, #tpu.memory_space<vmem>>, vector<8x8xf32>
    tpu.vector_store %arg7[%c0_23, %c0_24], %21 {strides = array<i32>} : memref<8x8xf32, #tpu.memory_space<vmem>>, vector<8x8xf32>,
    %23 = vector.extract_strided_slice %6 {offsets = [2, 0], sizes = [8, 8], strides = [1, 1]} : vector<10x8xf32> to vector<8x8xf32>
    %c0_25 = arith.constant 0 : index
    %c12 = arith.constant 12 : index
    %24 = vector.load %arg4[%c0_25, %c12] : memref<8x16xf32, #tpu.memory_space<vmem>>, vector<8x4xf32>
    %cst_26 = arith.constant dense<0.000000e+00> : vector<8x4xf32>
    %25 = tpu.matmul %23, %24, %cst_26 {dimension_numbers = #tpu.dot_dimension_numbers<[1], [0], [0], [1], [0, 0, 1, 1], [], []>} : vector<8x8xf32>, vector<8x4xf32>, vector<8x4xf32> -> vector<8x4xf32>
    %c0_27 = arith.constant 0 : index
    %c4_28 = arith.constant 4 : index
    %26 = vector.load %arg7[%c0_27, %c4_28] : memref<8x8xf32, #tpu.memory_space<vmem>>, vector<8x4xf32>
    %27 = arith.addf %26, %25 : vector<8x4xf32>
    %c0_29 = arith.constant 0 : index
    %c4_30 = arith.constant 4 : index
    %28 = vector.load %arg7[%c0_29, %c4_30] : memref<8x8xf32, #tpu.memory_space<vmem>>, vector<8x4xf32>
    tpu.vector_store %arg7[%c0_29, %c4_30], %27 {strides = array<i32>} : memref<8x8xf32, #tpu.memory_space<vmem>>, vector<8x4xf32>,
    %c0_31 = arith.constant 0 : index
    %c0_32 = arith.constant 0 : index
    %29 = vector.load %arg7[%c0_31, %c0_32] : memref<8x8xf32, #tpu.memory_space<vmem>>, vector<8x8xf32>
    %c0_33 = arith.constant 0 : index
    %c0_34 = arith.constant 0 : index
    %c0_35 = arith.constant 0 : index
    %30 = vector.load %arg6[%c0_33, %c0_34, %c0_35] : memref<1x8x8xf32, #tpu.memory_space<vmem>>, vector<1x8x8xf32>
    %31 = vector.shape_cast %30 : vector<1x8x8xf32> to vector<8x8xf32>
    %32 = vector.shape_cast %29 : vector<8x8xf32> to vector<1x8x8xf32>
    tpu.vector_store %arg6[%c0_33, %c0_34, %c0_35], %32 {strides = array<i32>} : memref<1x8x8xf32, #tpu.memory_space<vmem>>, vector<1x8x8xf32>,
    return
  }
  func.func @transform_0(%arg0: i32, %arg1: i32) -> (i32, i32, i32) {
    %c0_i32 = arith.constant 0 : i32
    %c0_i32_0 = arith.constant 0 : i32
    return %arg1, %arg0, %c0_i32 : i32, i32, i32
  }
  func.func @transform_1(%arg0: i32, %arg1: i32) -> (i32, i32, i32, i32) {
    %c0_i32 = arith.constant 0 : i32
    %c0_i32_0 = arith.constant 0 : i32
    %c0_i32_1 = arith.constant 0 : i32
    return %arg1, %arg0, %c0_i32, %c0_i32_0 : i32, i32, i32, i32
  }
  func.func @transform_2(%arg0: i32, %arg1: i32) -> (i32, i32) {
    %c0_i32 = arith.constant 0 : i32
    %c0_i32_0 = arith.constant 0 : i32
    %c0_i32_1 = arith.constant 0 : i32
    return %c0_i32, %c0_i32_0 : i32, i32
  }
  func.func @transform_3(%arg0: i32, %arg1: i32) -> (i32, i32) {
    %c0_i32 = arith.constant 0 : i32
    %c0_i32_0 = arith.constant 0 : i32
    %c0_i32_1 = arith.constant 0 : i32
    return %c0_i32, %c0_i32_0 : i32, i32
  }
  func.func @transform_4(%arg0: i32, %arg1: i32) -> (i32, i32, i32) {
    %c0_i32 = arith.constant 0 : i32
    %c0_i32_0 = arith.constant 0 : i32
    return %arg1, %arg0, %c0_i32 : i32, i32, i32
  }
}

</mosaic_0001>

<bundles_post_ra>
// kernel: tpu_custom_call.1
= control target key start
LH: loop header
LB: loop body
LE: loop exit
PB: predicated region body
PF: predicated region fallthrough
CT: control target
= control target key end

     0   :  { %s790_s15 = smov 0   ;;  %s792_s16 = smov 0   ;;  %s871_s0 = inlined_call_operand.vmem [shape: f32[2,24,8], index: 0, kind: input, shape index: {}]   ;;  %s872_s1 = inlined_call_operand.vmem [shape: f32[2,3,2,8], index: 1, kind: input, shape index: {}]   ;;  %s873_s2 = inlined_call_operand.vmem [shape: f32[8,16], index: 2, kind: input, shape index: {}]   ;;  %s874_s3 = inlined_call_operand.vmem [shape: f32[1,8], index: 3, kind: input, shape index: {}]   ;;  %s875_s4 = inlined_call_operand.vmem [shape: f32[2,20,8], index: 4, kind: output, shape index: {}]  }
   0x1   :  { %s794_s17 = smov 0   ;;  %s796_s18 = smov 0  }
   0x2   :  { %s798_s19 = smov 0  }
   0x3 LB: > { %s23_s20 = sadd.s32 1, %s750_s17  ;;  %s26_s21 = sadd.s32 1, %s754_s18  ;;  %s758_s19 = sphi %s798_s19, %s14_s19   ;;  %s754_s18 = sphi %s796_s18, %s879_s18   ;;  %s750_s17 = sphi %s794_s17, %s878_s17   ;;  %s746_s16 = sphi %s792_s16, %s877_s16   ;;  %s742_s15 = sphi %s790_s15, %s876_s15  }
   0x4   : > { %p24_p0 = scmp.ge.s32.totalorder %s23_s20, 2  ;;  %p643_p1 = scmp.ge.s32.totalorder %s758_s19, 1 }
   0x5   : > { %p196_p2 = scmp.lt.s32.totalorder %s758_s19, 7 }
   0x6   : > { %s881_s20 = smov (%p24_p0, %s23_s20), 0  ;;  %s883_s21 = smov (!%p24_p0, %s26_s21), %s754_s18 }
   0x7   : > { %p197_p3 = pnand %p643_p1, %p196_p2  ;;  %p28_p4 = scmp.ge.s32.totalorder %s883_s21, 3 }
   0x8   : > { %s760_s24 = smov (!%p197_p3), 116   ;;  %p236_p5 = scmp.lt.s32.totalorder (!%p197_p3), %s742_s15, 1 }
   0x9   : > { %s885_s21 = smov (%p28_p4, %s883_s21), 0  ;;  %200 = sbr.rel (%p197_p3) target bundleno = 450 (0x1c2), region = 36 }
   0xa   : > { %p238_p6 = scmp.lt.s32.totalorder (!%p197_p3), %s746_s16, 2  ;;  %s763_s27 = smov (!%p197_p3), 124  }
   0xb   : > { %s764_s12 = smov (!%p197_p3), 4  }
   0xe   : > { %v444_v0 = vld [vmem:[%s873_s2] sm:$0xff]  ;;  %v761_v1 = vmov 0.0   ;;  %vm762_vm0 = vmmov 0   ;;  %vm279_vm1 = vcmask 64512   ;;  %s887_s15 = smov (!%p236_p5, %s742_s15), 1  ;;  %s889_s16 = smov (!%p238_p6, %s746_s16), 2 }
   0xf   : > { %450 = vrot.lane.b32.xlu0 %v444_v0, %s760_s24  ;;  %659 = vmatprep.subr.mxu0 %v761_v1  ;;  %v647_v2 = vld [vmem:[%s874_s3] ss:$0 sm:$0xff]  ;;  %s674_s28 = smul.u32 3, %s887_s15  ;;  %vm269_vm2 = vcmask 1040384   ;;  %vm445_vm3 = vcmask 1045504   ;;  %vm361_vm4 = vcmask 1046528  }
  0x10   : > { %660 = vmatpush3.msra.mxu0 %v444_v0  ;;  %661 = vmatprep.mubr.msk.f32.mxu0 %vm762_vm0, %v761_v1  ;;  %280 = vst.msk [vmem:[#allocation2] sm:$0xff] %vm279_vm1, %v647_v2  ;;  %vm357_vm5 = vcmask 31744   ;;  %vm531_vm6 = vcmask 64544  }
  0x11   : > { %669 = vmatprep.subr.mxu0 %v761_v1  ;;  %664 = vmatprep.subr.mxu1 %v761_v1  ;;  %s833_s29 = sadd.s32 %s674_s28, %s889_s16 }
  0x12   : > { %666 = vmatprep.mubr.msk.f32.mxu1 %vm762_vm0, %v761_v1  ;;  %s644_s30 = sshll.u32 %s833_s29, 3  ;;  %s645_s5 = sshll.u32 %s833_s29, 1 }
  0x13   : > { %366 = vrot.lane.b32.xlu0 %v444_v0, %s763_s27  ;;  %s243_s8 = scalar_lea.vmem %s871_s0, %s644_s30  ;;  %s251_s11 = scalar_lea.vmem %s872_s1, %s645_s5 }
  0x14   : > { %v260_v3 = vld [vmem:[%s251_s11] sm:$0x1]  ;;  %v262_v5 = vld [vmem:[%s251_s11 + $0x1] sm:$0x1]  ;;  %s259_s15 = scalar_lea.vmem %s875_s4, %s644_s30 }
  0x15   : > { %v261_v4 = vld [vmem:[%s243_s8] sm:$0xff]  ;;  %v267_v7 = vrot.slane %v262_v5, 7 }
  0x16   : > { %v264_v6 = vrot.slane %v261_v4, 7 }
  0x17   : > { %v355_v18 = vld [vmem:[#allocation2] sm:$0xff] }
  0x18   : > { %v270_v8 = vsel %vm269_vm2, %v260_v3, %v264_v6  ;;  %v271_v9 = vsel %vm269_vm2, %v264_v6, %v267_v7 }
  0x19   : > { %662 = vmatmul.mubr.msk.f32.vlgmr.msra.gmra.mxu0 %vm279_vm1, %v270_v8  ;;  %v362_v10 = vrot.slane %v270_v8, 1  ;;  %v446_v11 = vrot.slane %v270_v8, 2  ;;  %v447_v12 = vrot.slane %v271_v9, 2  ;;  %v363_v13 = vrot.slane %v271_v9, 1 }
  0x1a   : > { %671 = vmatprep.mubr.msk.f32.mxu0 %vm762_vm0, %v761_v1 }
  0x1b   : > { %v448_v14 = vsel %vm445_vm3, %v446_v11, %v447_v12  ;;  %v364_v15 = vsel %vm361_vm4, %v362_v10, %v363_v13 }
  0x81   : > { %v451_v16 = vpop.permute.xlu0 %450 }
  0x82   : > { %670 = vmatpush3.msra.mxu0 %v451_v16 }
  0x83   : > { %672 = vmatmul.mubr.msk.f32.vlgmr.msra.gmra.mxu0 %vm279_vm1, %v448_v14 }
  0x85   : > { %v367_v17 = vpop.permute.xlu0 %366 }
  0x86   : > { %665 = vmatpush3.msra.mxu1 %v367_v17 }
  0x87   : > { %667 = vmatmul.mubr.msk.f32.vlgmr.msra.gmra.mxu1 %vm279_vm1, %v364_v15 }
  0xd9   : > { %v351_v19 = vpop.f32.mrf.mxu0 }
  0xda   : > { %v356_v20 = vadd.f32 %v355_v18, %v351_v19 }
  0xdb   : > { %v663_v21 = vpop.f32.mrf.mxu0 }
  0xdc   : > { %358 = vst.msk [vmem:[#allocation2] sm:$0xff] %vm357_vm5, %v356_v20 }
  0xe3   : > { %v441_v24 = vld [vmem:[#allocation2] sm:$0xff] }
 0x143   : > { %v521_v22 = vpop.f32.mrf.mxu0 }
 0x144   : > { %527 = vrot.lane.b32.xlu1 %v521_v22, %s764_s12 }
 0x145   : > { %v673_v23 = vpop.f32.mrf.mxu0 }
 0x147   : > { %v437_v25 = vpop.f32.mrf.mxu1 }
 0x148   : > { %v442_v26 = vadd.f32 %v441_v24, %v437_v25 }
 0x149   : > { %v668_v27 = vpop.f32.mrf.mxu1 }
 0x14a   : > { %443 = vst.msk [vmem:[#allocation2] sm:$0xff] %vm279_vm1, %v442_v26 }
 0x151   : > { %v525_v28 = vld [vmem:[#allocation2] sm:$0xff] }
 0x1b6   : > { %v528_v29 = vpop.permute.xlu1 %527 }
 0x1b7   : > { %v530_v30 = vadd.f32 %v528_v29, %v525_v28 }
 0x1b9   : > { %532 = vst.msk [vmem:[#allocation2] sm:$0xff] %vm531_vm6, %v530_v30 }
 0x1c0   : > { %v533_v31 = vld [vmem:[#allocation2] sm:$0xff] }
 0x1c1   : > { %534 = vst.msk [vmem:[%s259_s15] sm:$0xff] %vm279_vm1, %v533_v31 }
 0x1c2 PF: > { %s14_s19 = sadd.s32 1, %s758_s19   ;;  %s876_s15 = smov %s750_s17 }
 0x1c3   : > { %p11_p7 = scmp.ge.s32.totalorder %s14_s19, 8   ;;  %s877_s16 = smov %s754_s18 }
 0x1c4   : > { %s878_s17 = smov %s881_s20  ;;  %s879_s18 = smov %s885_s21 }
 0x1c5   :  { %13 = sbr.rel (!%p11_p7) target bundleno = 3 (0x3), region = 69 }

// kernel: tpu_custom_call.1
= control target key start
LH: loop header
LB: loop body
LE: loop exit
PB: predicated region body
PF: predicated region fallthrough
CT: control target
= control target key end

     0   :  { %s790_s15 = smov 0   ;;  %s792_s16 = smov 0   ;;  %s871_s0 = inlined_call_operand.vmem [shape: f32[2,24,8], index: 0, kind: input, shape index: {}]   ;;  %s872_s1 = inlined_call_operand.vmem [shape: f32[2,3,2,8], index: 1, kind: input, shape index: {}]   ;;  %s873_s2 = inlined_call_operand.vmem [shape: f32[8,16], index: 2, kind: input, shape index: {}]   ;;  %s874_s3 = inlined_call_operand.vmem [shape: f32[1,8], index: 3, kind: input, shape index: {}]   ;;  %s875_s4 = inlined_call_operand.vmem [shape: f32[2,20,8], index: 4, kind: output, shape index: {}]  }
   0x1   :  { %s794_s17 = smov 0   ;;  %s796_s18 = smov 0  }
   0x2   :  { %s798_s19 = smov 0  }
   0x3 LB: > { %s23_s20 = sadd.s32 1, %s750_s17  ;;  %s26_s21 = sadd.s32 1, %s754_s18  ;;  %s758_s19 = sphi %s798_s19, %s14_s19   ;;  %s754_s18 = sphi %s796_s18, %s879_s18   ;;  %s750_s17 = sphi %s794_s17, %s878_s17   ;;  %s746_s16 = sphi %s792_s16, %s877_s16   ;;  %s742_s15 = sphi %s790_s15, %s876_s15  }
   0x4   : > { %p24_p0 = scmp.ge.s32.totalorder %s23_s20, 2  ;;  %p643_p1 = scmp.ge.s32.totalorder %s758_s19, 1 }
   0x5   : > { %p196_p2 = scmp.lt.s32.totalorder %s758_s19, 7 }
   0x6   : > { %s881_s20 = smov (%p24_p0, %s23_s20), 0  ;;  %s883_s21 = smov (!%p24_p0, %s26_s21), %s754_s18 }
   0x7   : > { %p197_p3 = pnand %p643_p1, %p196_p2  ;;  %p28_p4 = scmp.ge.s32.totalorder %s883_s21, 3 }
   0x8   : > { %s760_s24 = smov (!%p197_p3), 116   ;;  %p236_p5 = scmp.lt.s32.totalorder (!%p197_p3), %s742_s15, 1 }
   0x9   : > { %s885_s21 = smov (%p28_p4, %s883_s21), 0  ;;  %200 = sbr.rel (%p197_p3) target bundleno = 450 (0x1c2), region = 36 }
   0xa   : > { %p238_p6 = scmp.lt.s32.totalorder (!%p197_p3), %s746_s16, 2  ;;  %s763_s27 = smov (!%p197_p3), 124  }
   0xb   : > { %s764_s12 = smov (!%p197_p3), 4  }
   0xe   : > { %v444_v0 = vld [vmem:[%s873_s2] sm:$0xff]  ;;  %v761_v1 = vmov 0.0   ;;  %vm762_vm0 = vmmov 0   ;;  %vm279_vm1 = vcmask 64512   ;;  %s887_s15 = smov (!%p236_p5, %s742_s15), 1  ;;  %s889_s16 = smov (!%p238_p6, %s746_s16), 2 }
   0xf   : > { %450 = vrot.lane.b32.xlu0 %v444_v0, %s760_s24  ;;  %659 = vmatprep.subr.mxu0 %v761_v1  ;;  %v647_v2 = vld [vmem:[%s874_s3] ss:$0 sm:$0xff]  ;;  %s674_s28 = smul.u32 3, %s887_s15  ;;  %vm269_vm2 = vcmask 1040384   ;;  %vm445_vm3 = vcmask 1045504   ;;  %vm361_vm4 = vcmask 1046528  }
  0x10   : > { %660 = vmatpush3.msra.mxu0 %v444_v0  ;;  %661 = vmatprep.mubr.msk.f32.mxu0 %vm762_vm0, %v761_v1  ;;  %280 = vst.msk [vmem:[#allocation2] sm:$0xff] %vm279_vm1, %v647_v2  ;;  %vm357_vm5 = vcmask 31744   ;;  %vm531_vm6 = vcmask 64544  }
  0x11   : > { %669 = vmatprep.subr.mxu0 %v761_v1  ;;  %664 = vmatprep.subr.mxu1 %v761_v1  ;;  %s833_s29 = sadd.s32 %s674_s28, %s889_s16 }
  0x12   : > { %666 = vmatprep.mubr.msk.f32.mxu1 %vm762_vm0, %v761_v1  ;;  %s644_s30 = sshll.u32 %s833_s29, 3  ;;  %s645_s5 = sshll.u32 %s833_s29, 1 }
  0x13   : > { %366 = vrot.lane.b32.xlu0 %v444_v0, %s763_s27  ;;  %s243_s8 = scalar_lea.vmem %s871_s0, %s644_s30  ;;  %s251_s11 = scalar_lea.vmem %s872_s1, %s645_s5 }
  0x14   : > { %v260_v3 = vld [vmem:[%s251_s11] sm:$0x1]  ;;  %v262_v5 = vld [vmem:[%s251_s11 + $0x1] sm:$0x1]  ;;  %s259_s15 = scalar_lea.vmem %s875_s4, %s644_s30 }
  0x15   : > { %v261_v4 = vld [vmem:[%s243_s8] sm:$0xff]  ;;  %v267_v7 = vrot.slane %v262_v5, 7 }
  0x16   : > { %v264_v6 = vrot.slane %v261_v4, 7 }
  0x17   : > { %v355_v18 = vld [vmem:[#allocation2] sm:$0xff] }
  0x18   : > { %v270_v8 = vsel %vm269_vm2, %v260_v3, %v264_v6  ;;  %v271_v9 = vsel %vm269_vm2, %v264_v6, %v267_v7 }
  0x19   : > { %662 = vmatmul.mubr.msk.f32.vlgmr.msra.gmra.mxu0 %vm279_vm1, %v270_v8  ;;  %v362_v10 = vrot.slane %v270_v8, 1  ;;  %v446_v11 = vrot.slane %v270_v8, 2  ;;  %v447_v12 = vrot.slane %v271_v9, 2  ;;  %v363_v13 = vrot.slane %v271_v9, 1 }
  0x1a   : > { %671 = vmatprep.mubr.msk.f32.mxu0 %vm762_vm0, %v761_v1 }
  0x1b   : > { %v448_v14 = vsel %vm445_vm3, %v446_v11, %v447_v12  ;;  %v364_v15 = vsel %vm361_vm4, %v362_v10, %v363_v13 }
  0x81   : > { %v451_v16 = vpop.permute.xlu0 %450 }
  0x82   : > { %670 = vmatpush3.msra.mxu0 %v451_v16 }
  0x83   : > { %672 = vmatmul.mubr.msk.f32.vlgmr.msra.gmra.mxu0 %vm279_vm1, %v448_v14 }
  0x85   : > { %v367_v17 = vpop.permute.xlu0 %366 }
  0x86   : > { %665 = vmatpush3.msra.mxu1 %v367_v17 }
  0x87   : > { %667 = vmatmul.mubr.msk.f32.vlgmr.msra.gmra.mxu1 %vm279_vm1, %v364_v15 }
  0xd9   : > { %v351_v19 = vpop.f32.mrf.mxu0 }
  0xda   : > { %v356_v20 = vadd.f32 %v355_v18, %v351_v19 }
  0xdb   : > { %v663_v21 = vpop.f32.mrf.mxu0 }
  0xdc   : > { %358 = vst.msk [vmem:[#allocation2] sm:$0xff] %vm357_vm5, %v356_v20 }
  0xe3   : > { %v441_v24 = vld [vmem:[#allocation2] sm:$0xff] }
 0x143   : > { %v521_v22 = vpop.f32.mrf.mxu0 }
 0x144   : > { %527 = vrot.lane.b32.xlu1 %v521_v22, %s764_s12 }
 0x145   : > { %v673_v23 = vpop.f32.mrf.mxu0 }
 0x147   : > { %v437_v25 = vpop.f32.mrf.mxu1 }
 0x148   : > { %v442_v26 = vadd.f32 %v441_v24, %v437_v25 }
 0x149   : > { %v668_v27 = vpop.f32.mrf.mxu1 }
 0x14a   : > { %443 = vst.msk [vmem:[#allocation2] sm:$0xff] %vm279_vm1, %v442_v26 }
 0x151   : > { %v525_v28 = vld [vmem:[#allocation2] sm:$0xff] }
 0x1b6   : > { %v528_v29 = vpop.permute.xlu1 %527 }
 0x1b7   : > { %v530_v30 = vadd.f32 %v528_v29, %v525_v28 }
 0x1b9   : > { %532 = vst.msk [vmem:[#allocation2] sm:$0xff] %vm531_vm6, %v530_v30 }
 0x1c0   : > { %v533_v31 = vld [vmem:[#allocation2] sm:$0xff] }
 0x1c1   : > { %534 = vst.msk [vmem:[%s259_s15] sm:$0xff] %vm279_vm1, %v533_v31 }
 0x1c2 PF: > { %s14_s19 = sadd.s32 1, %s758_s19   ;;  %s876_s15 = smov %s750_s17 }
 0x1c3   : > { %p11_p7 = scmp.ge.s32.totalorder %s14_s19, 8   ;;  %s877_s16 = smov %s754_s18 }
 0x1c4   : > { %s878_s17 = smov %s881_s20  ;;  %s879_s18 = smov %s885_s21 }
 0x1c5   :  { %13 = sbr.rel (!%p11_p7) target bundleno = 3 (0x3), region = 69 }

</bundles_post_ra>
